<compile_context>
chip_gen: v5e
topology: v5e:2x2
jax: 0.10.0
libtpu: 0.0.40
codegen_flags: <defaults>
</compile_context>

<pallas_src>
import math

import jax
import jax.numpy as jnp
from jax.experimental import pallas as pl
from jax.experimental.pallas import tpu as pltpu


def value_net_kernel(state_ref, action_ref, w1s_ref, w1a_ref, b1_ref,
                     w2_ref, b2_ref, w3_ref, b3_ref, o_ref):
    s = state_ref[...]
    a = action_ref[...]

    # linear1 (fused concat: split-K matmul) + relu
    h1 = (jnp.dot(s, w1s_ref[...], preferred_element_type=jnp.float32)
          + jnp.dot(a, w1a_ref[...], preferred_element_type=jnp.float32)
          + b1_ref[...])
    h1 = jnp.maximum(h1, 0.0)

    # linear2 + relu  (the only sizeable MXU matmul: (TB,H)@(H,H))
    h2 = jnp.dot(h1, w2_ref[...], preferred_element_type=jnp.float32) + b2_ref[...]
    h2 = jnp.maximum(h2, 0.0)

    # linear3: N=1 matmul replaced by VPU mul + XLU lane reduction.
    # w3 is stored as a (1, H) row; b3 is a scalar in SMEM.
    o = jnp.sum(h2 * w3_ref[...], axis=-1, keepdims=True) + b3_ref[0]
    o_ref[...] = o.astype(o_ref.dtype)


def value_network_forward(state, action, params, *, block_b=512):
    """state: (B, num_inputs), action: (B, num_actions) -> (B, 1)."""
    w1s, w1a, b1, w2, b2, w3, b3 = params
    state = state.astype(jnp.float32)
    action = action.astype(jnp.float32)

    B, n_in = state.shape
    n_act = action.shape[1]
    H = w2.shape[0]

    # Batch tile: multiple of 8 (sublane), capped at block_b for VMEM/pipelining.
    TB = min(block_b, ((B + 7) // 8) * 8)
    B_pad = pl.cdiv(B, TB) * TB
    if B_pad != B:
        state = jnp.pad(state, ((0, B_pad - B), (0, 0)))
        action = jnp.pad(action, ((0, B_pad - B), (0, 0)))
    nb = B_pad // TB

    out = pl.pallas_call(
        value_net_kernel,
        out_shape=jax.ShapeDtypeStruct((B_pad, 1), jnp.float32),
        grid=(nb,),
        in_specs=[
            # activations: tiled over batch (pipelined / double-buffered)
            pl.BlockSpec((TB, n_in), lambda i: (i, 0)),
            pl.BlockSpec((TB, n_act), lambda i: (i, 0)),
            # weights / biases: invariant full blocks, VMEM-resident
            pl.BlockSpec((n_in, H), lambda i: (0, 0)),
            pl.BlockSpec((n_act, H), lambda i: (0, 0)),
            pl.BlockSpec((1, H), lambda i: (0, 0)),
            pl.BlockSpec((H, H), lambda i: (0, 0)),
            pl.BlockSpec((1, H), lambda i: (0, 0)),
            pl.BlockSpec((1, H), lambda i: (0, 0)),
            # b3 scalar lives in SMEM (1-D -> pads to a few bytes)
            pl.BlockSpec(memory_space=pltpu.MemorySpace.SMEM),
        ],
        out_specs=pl.BlockSpec((TB, 1), lambda i: (i, 0)),
        compiler_params=pltpu.CompilerParams(
            dimension_semantics=("parallel",)),
    )(state, action, w1s, w1a, b1, w2, b2, w3, b3)

    return out[:B] if B_pad != B else out


def init_params(key, num_inputs, num_actions, hidden_size, init_w=0.003):
    """Deterministic init matching PyTorch nn.Linear defaults + custom linear3 init.

    Kernel layout:
      w1 split into w1s (num_inputs, H) and w1a (num_actions, H) — the
      transposed PyTorch linear1 weight split along its input dimension.
      w2 is (H, H) transposed; w3 is a (1, H) row; biases are (1, H)
      except b3 which is a 1-D scalar of shape (1,).
    """
    d_in = num_inputs + num_actions
    k1, k2, k3, k4, k5, k6 = jax.random.split(key, 6)

    def uniform(k, shape, bound):
        return jax.random.uniform(k, shape, jnp.float32, -bound, bound)

    bound1 = 1.0 / math.sqrt(d_in)
    bound2 = 1.0 / math.sqrt(hidden_size)

    w1 = uniform(k1, (d_in, hidden_size), bound1)
    w1s, w1a = w1[:num_inputs], w1[num_inputs:]
    b1 = uniform(k2, (1, hidden_size), bound1)
    w2 = uniform(k3, (hidden_size, hidden_size), bound2)
    b2 = uniform(k4, (1, hidden_size), bound2)
    # linear3: uniform_(-init_w, init_w) for both weight and bias
    w3 = uniform(k5, (1, hidden_size), init_w)
    b3 = uniform(k6, (1,), init_w)
    return (w1s, w1a, b1, w2, b2, w3, b3)


def reference_forward(state, action, params):
    """Pure-JAX reference for correctness check."""
    w1s, w1a, b1, w2, b2, w3, b3 = params
    x = jnp.concatenate([state, action], axis=1)
    w1 = jnp.concatenate([w1s, w1a], axis=0)
    x = jnp.maximum(x @ w1 + b1, 0.0)
    x = jnp.maximum(x @ w2 + b2, 0.0)
    return x @ w3.T + b3[None, :]


if __name__ == "__main__":
    # Small shapes consistent with the module: batch=8, num_inputs=6,
    # num_actions=2, hidden_size=32.
    batch, num_inputs, num_actions, hidden_size = 8, 6, 2, 32

    key = jax.random.PRNGKey(0)
    k_state, k_action, k_params = jax.random.split(key, 3)

    state = jax.random.normal(k_state, (batch, num_inputs), jnp.float32)
    action = jax.random.normal(k_action, (batch, num_actions), jnp.float32)
    params = init_params(k_params, num_inputs, num_actions, hidden_size)

    out = value_network_forward(state, action, params)
    out = jax.block_until_ready(out)

    ref = reference_forward(state, action, params)
    assert out.shape == (batch, 1), out.shape
    assert jnp.allclose(out, ref, atol=1e-5, rtol=1e-5), "mismatch vs reference"

    print("KERNEL_OK")
</pallas_src>

<mosaic_0001>
module attributes {stable_mosaic.version = 11 : i64} {
  func.func @value_net_kernel(%arg0: i32, %arg1: memref<8x6xf32, #tpu.memory_space<vmem>>, %arg2: memref<8x2xf32, #tpu.memory_space<vmem>>, %arg3: memref<6x32xf32, #tpu.memory_space<vmem>>, %arg4: memref<2x32xf32, #tpu.memory_space<vmem>>, %arg5: memref<1x32xf32, #tpu.memory_space<vmem>>, %arg6: memref<32x32xf32, #tpu.memory_space<vmem>>, %arg7: memref<1x32xf32, #tpu.memory_space<vmem>>, %arg8: memref<1x32xf32, #tpu.memory_space<vmem>>, %arg9: memref<1xf32, #tpu.memory_space<smem>>, %arg10: memref<8x1xf32, #tpu.memory_space<vmem>>) attributes {dimension_semantics = [#tpu.dimension_semantics<parallel>], iteration_bounds = array<i64: 1>, scalar_prefetch = 0 : i64, scratch_operands = 0 : i64, tpu.core_type = #tpu.core_type<tc>, window_params = [{transform_indices = @transform_0, window_bounds = array<i64: 8, 6>}, {transform_indices = @transform_1, window_bounds = array<i64: 8, 2>}, {pipeline_mode = #tpu.pipeline_mode<synchronous>, transform_indices = @transform_2, window_bounds = array<i64: 6, 32>}, {pipeline_mode = #tpu.pipeline_mode<synchronous>, transform_indices = @transform_3, window_bounds = array<i64: 2, 32>}, {pipeline_mode = #tpu.pipeline_mode<synchronous>, transform_indices = @transform_4, window_bounds = array<i64: 1, 32>}, {pipeline_mode = #tpu.pipeline_mode<synchronous>, transform_indices = @transform_5, window_bounds = array<i64: 32, 32>}, {pipeline_mode = #tpu.pipeline_mode<synchronous>, transform_indices = @transform_6, window_bounds = array<i64: 1, 32>}, {pipeline_mode = #tpu.pipeline_mode<synchronous>, transform_indices = @transform_7, window_bounds = array<i64: 1, 32>}, {transform_indices = @transform_8, window_bounds = array<i64: 1>}, {transform_indices = @transform_9, window_bounds = array<i64: 8, 1>}]} {
    %c0 = arith.constant 0 : index
    %c0_0 = arith.constant 0 : index
    %0 = vector.load %arg1[%c0, %c0_0] : memref<8x6xf32, #tpu.memory_space<vmem>>, vector<8x6xf32>
    %c0_1 = arith.constant 0 : index
    %c0_2 = arith.constant 0 : index
    %1 = vector.load %arg2[%c0_1, %c0_2] : memref<8x2xf32, #tpu.memory_space<vmem>>, vector<8x2xf32>
    %c0_3 = arith.constant 0 : index
    %c0_4 = arith.constant 0 : index
    %2 = vector.load %arg3[%c0_3, %c0_4] : memref<6x32xf32, #tpu.memory_space<vmem>>, vector<6x32xf32>
    %cst = arith.constant dense<0.000000e+00> : vector<8x32xf32>
    %3 = tpu.matmul %0, %2, %cst {dimension_numbers = #tpu.dot_dimension_numbers<[1], [0], [0], [1], [0, 0, 1, 1], [], []>} : vector<8x6xf32>, vector<6x32xf32>, vector<8x32xf32> -> vector<8x32xf32>
    %c0_5 = arith.constant 0 : index
    %c0_6 = arith.constant 0 : index
    %4 = vector.load %arg4[%c0_5, %c0_6] : memref<2x32xf32, #tpu.memory_space<vmem>>, vector<2x32xf32>
    %cst_7 = arith.constant dense<0.000000e+00> : vector<8x32xf32>
    %5 = tpu.matmul %1, %4, %cst_7 {dimension_numbers = #tpu.dot_dimension_numbers<[1], [0], [0], [1], [0, 0, 1, 1], [], []>} : vector<8x2xf32>, vector<2x32xf32>, vector<8x32xf32> -> vector<8x32xf32>
    %6 = arith.addf %3, %5 : vector<8x32xf32>
    %c0_8 = arith.constant 0 : index
    %c0_9 = arith.constant 0 : index
    %7 = vector.load %arg5[%c0_8, %c0_9] : memref<1x32xf32, #tpu.memory_space<vmem>>, vector<1x32xf32>
    %8 = vector.broadcast %7 : vector<1x32xf32> to vector<8x32xf32>
    %9 = arith.addf %6, %8 : vector<8x32xf32>
    %cst_10 = arith.constant 0.000000e+00 : f32
    %10 = vector.broadcast %cst_10 : f32 to vector<8x32xf32>
    %11 = arith.maximumf %9, %10 : vector<8x32xf32>
    %c0_11 = arith.constant 0 : index
    %c0_12 = arith.constant 0 : index
    %12 = vector.load %arg6[%c0_11, %c0_12] : memref<32x32xf32, #tpu.memory_space<vmem>>, vector<32x32xf32>
    %cst_13 = arith.constant dense<0.000000e+00> : vector<8x32xf32>
    %13 = tpu.matmul %11, %12, %cst_13 {dimension_numbers = #tpu.dot_dimension_numbers<[1], [0], [0], [1], [0, 0, 1, 1], [], []>} : vector<8x32xf32>, vector<32x32xf32>, vector<8x32xf32> -> vector<8x32xf32>
    %c0_14 = arith.constant 0 : index
    %c0_15 = arith.constant 0 : index
    %14 = vector.load %arg7[%c0_14, %c0_15] : memref<1x32xf32, #tpu.memory_space<vmem>>, vector<1x32xf32>
    %15 = vector.broadcast %14 : vector<1x32xf32> to vector<8x32xf32>
    %16 = arith.addf %13, %15 : vector<8x32xf32>
    %cst_16 = arith.constant 0.000000e+00 : f32
    %17 = vector.broadcast %cst_16 : f32 to vector<8x32xf32>
    %18 = arith.maximumf %16, %17 : vector<8x32xf32>
    %c0_17 = arith.constant 0 : index
    %c0_18 = arith.constant 0 : index
    %19 = vector.load %arg8[%c0_17, %c0_18] : memref<1x32xf32, #tpu.memory_space<vmem>>, vector<1x32xf32>
    %20 = vector.broadcast %19 : vector<1x32xf32> to vector<8x32xf32>
    %21 = arith.mulf %18, %20 : vector<8x32xf32>
    %cst_19 = arith.constant dense<0.000000e+00> : vector<8xf32>
    %22 = vector.multi_reduction <add>, %21, %cst_19 [1] : vector<8x32xf32> to vector<8xf32>
    %23 = vector.shape_cast %22 : vector<8xf32> to vector<8x1xf32>
    %c0_20 = arith.constant 0 : index
    %24 = memref.load %arg9[%c0_20] : memref<1xf32, #tpu.memory_space<smem>>
    %25 = vector.broadcast %24 : f32 to vector<8x1xf32>
    %26 = arith.addf %23, %25 : vector<8x1xf32>
    %c0_21 = arith.constant 0 : index
    %c0_22 = arith.constant 0 : index
    %27 = vector.load %arg10[%c0_21, %c0_22] : memref<8x1xf32, #tpu.memory_space<vmem>>, vector<8x1xf32>
    tpu.vector_store %arg10[%c0_21, %c0_22], %26 {strides = array<i32>} : memref<8x1xf32, #tpu.memory_space<vmem>>, vector<8x1xf32>,
    return
  }
  func.func @transform_0(%arg0: i32) -> (i32, i32) {
    %c0_i32 = arith.constant 0 : i32
    %c0_i32_0 = arith.constant 0 : i32
    return %arg0, %c0_i32 : i32, i32
  }
  func.func @transform_1(%arg0: i32) -> (i32, i32) {
    %c0_i32 = arith.constant 0 : i32
    %c0_i32_0 = arith.constant 0 : i32
    return %arg0, %c0_i32 : i32, i32
  }
  func.func @transform_2(%arg0: i32) -> (i32, i32) {
    %c0_i32 = arith.constant 0 : i32
    %c0_i32_0 = arith.constant 0 : i32
    %c0_i32_1 = arith.constant 0 : i32
    return %c0_i32, %c0_i32_0 : i32, i32
  }
  func.func @transform_3(%arg0: i32) -> (i32, i32) {
    %c0_i32 = arith.constant 0 : i32
    %c0_i32_0 = arith.constant 0 : i32
    %c0_i32_1 = arith.constant 0 : i32
    return %c0_i32, %c0_i32_0 : i32, i32
  }
  func.func @transform_4(%arg0: i32) -> (i32, i32) {
    %c0_i32 = arith.constant 0 : i32
    %c0_i32_0 = arith.constant 0 : i32
    %c0_i32_1 = arith.constant 0 : i32
    return %c0_i32, %c0_i32_0 : i32, i32
  }
  func.func @transform_5(%arg0: i32) -> (i32, i32) {
    %c0_i32 = arith.constant 0 : i32
    %c0_i32_0 = arith.constant 0 : i32
    %c0_i32_1 = arith.constant 0 : i32
    return %c0_i32, %c0_i32_0 : i32, i32
  }
  func.func @transform_6(%arg0: i32) -> (i32, i32) {
    %c0_i32 = arith.constant 0 : i32
    %c0_i32_0 = arith.constant 0 : i32
    %c0_i32_1 = arith.constant 0 : i32
    return %c0_i32, %c0_i32_0 : i32, i32
  }
  func.func @transform_7(%arg0: i32) -> (i32, i32) {
    %c0_i32 = arith.constant 0 : i32
    %c0_i32_0 = arith.constant 0 : i32
    %c0_i32_1 = arith.constant 0 : i32
    return %c0_i32, %c0_i32_0 : i32, i32
  }
  func.func @transform_8(%arg0: i32) -> i32 {
    %c0_i32 = arith.constant 0 : i32
    %c0_i32_0 = arith.constant 0 : i32
    return %c0_i32 : i32
  }
  func.func @transform_9(%arg0: i32) -> (i32, i32) {
    %c0_i32 = arith.constant 0 : i32
    %c0_i32_0 = arith.constant 0 : i32
    return %arg0, %c0_i32 : i32, i32
  }
}

</mosaic_0001>

<bundles_post_ra>
// kernel: tpu_custom_call.1
= control target key start
LH: loop header
LB: loop body
LE: loop exit
PB: predicated region body
PF: predicated region fallthrough
CT: control target
= control target key end

     0   :  { %15 = vsyncpa [#allocation4], 0  ;;  %s329_s0 = inlined_call_operand.vmem [shape: f32[8,6], index: 0, kind: input, shape index: {}]   ;;  %s330_s1 = inlined_call_operand.vmem [shape: f32[8,2], index: 1, kind: input, shape index: {}]   ;;  %s331_s2 = inlined_call_operand.hbm [shape: f32[6,32], index: 2, kind: input, shape index: {}]   ;;  %s332_s3 = inlined_call_operand.vmem [shape: f32[2,32], index: 3, kind: input, shape index: {}]   ;;  %s333_s4 = inlined_call_operand.vmem [shape: f32[1,32], index: 4, kind: input, shape index: {}]   ;;  %s334_s5 = inlined_call_operand.hbm [shape: f32[32,32], index: 5, kind: input, shape index: {}]   ;;  %s335_s6 = inlined_call_operand.vmem [shape: f32[1,32], index: 6, kind: input, shape index: {}]   ;;  %s336_s7 = inlined_call_operand.vmem [shape: f32[1,32], index: 7, kind: input, shape index: {}]   ;;  %s337_s8 = inlined_call_operand.<no memory space> [shape: f32[1], index: 8, kind: input, shape index: {}]   ;;  %s338_s9 = inlined_call_operand.vmem [shape: f32[8,1], index: 9, kind: output, shape index: {}]  }
   0x1   :  { %s26_s11 = sshll.u32 %s331_s2, 4  ;;  %s27_s11 = int_to_ptr.hbm [resolvable:$true] %s26_s11 }
   0x2   :  { %16 = vsyncpa [#allocation6], 0  ;;  %s245_s12 = smov [#allocation3]   ;;  %s40_s16 = sshll.u32 %s334_s5, 4  ;;  %s41_s16 = int_to_ptr.hbm [resolvable:$true] %s40_s16 }
   0x3   :  { %s28_s13 = sshll.u32 %s245_s12, 4  ;;  %s246_s17 = smov [#allocation5]   ;;  %s29_s13 = int_to_ptr.vmem [resolvable:$true] %s28_s13 }
   0x4   :  { %31 = dma.hbm_to_vmem [thread:$0]  %s27_s11, 128, %s29_s13, [#allocation4]  }
   0x5   :  { %s42_s18 = sshll.u32 %s246_s17, 4  ;;  %s247_s19 = smov 128   ;;  %s43_s18 = int_to_ptr.vmem [resolvable:$true] %s42_s18 }
   0x6   :  { %s248_s20 = smov 8  }
   0x7   :  { %48 = dma.hbm_to_vmem [thread:$0]  %s41_s16, 512, %s43_s18, [#allocation6], %s247_s19, %s247_s19, %s248_s20  }
   0x8   :  { %241 = dma.done.wait [#allocation4], 128  }
   0x9   :  { %242 = vsyncadd [#allocation4], 4294967168 }
   0xa   :  { %243 = dma.done.wait [#allocation6], 512  }
   0xb   :  { %244 = vsyncadd [#allocation6], 4294966784  ;;  %vm71_vm0 = vcmask 1041408   ;;  %vm99_vm1 = vcmask 1045504   ;;  %vm67_vm2 = vcmask 15360   ;;  %vm95_vm3 = vcmask 48128  }
   0xc   :  { %v66_v0 = vld [vmem:[%s332_s3] sm:$0x3]  ;;  %v131_v5 = vld [vmem:[#allocation5 + $0x10] sm:$0xff]  ;;  %v130_v6 = vld [vmem:[#allocation5 + $0x8] sm:$0xff]  ;;  %vm137_vm4 = vcmask 261120   ;;  %v171_v21 = vstv %s337_s8  ;;  %vm173_vm5 = vcmask 7168  }
   0xd   :  { %v65_v1 = vld [vmem:[#allocation3] sm:$0x3f]  ;;  %181 = vmatpush.msk.msra.mxu0 %vm71_vm0, %v66_v0  ;;  %v129_v7 = vld [vmem:[#allocation5] sm:$0xff] }
   0xe   :  { %v64_v2 = vld [vmem:[%s330_s1] sm:$0xff]  ;;  %183 = vmatpush.msk.msra.mxu1 %vm99_vm1, %v65_v1 }
   0xf   :  { %v63_v3 = vld [vmem:[%s329_s0] sm:$0xff]  ;;  %182 = vmatmul.msk.f32.vlgmr.msra.gmra.mxu0 %vm67_vm2, %v64_v2 }
  0x10   :  { %184 = vmatmul.msk.f32.vlgmr.msra.gmra.mxu1 %vm95_vm3, %v63_v3  ;;  %v132_v4 = vld [vmem:[#allocation5 + $0x18] sm:$0xff] }
  0x11   :  { %153 = vmatpush.msra.mxu2 %v132_v4  ;;  %v190_v8 = vld [vmem:[%s333_s4] ss:$0 sm:$0xff] }
  0x12   :  { %v191_v14 = vld [vmem:[%s335_s6] ss:$0 sm:$0xff] }
  0x13   :  { %154 = vmatpush.msra.mxu2 %v131_v5  ;;  %v192_v17 = vld [vmem:[%s336_s7] ss:$0 sm:$0xff] }
  0x15   :  { %155 = vmatpush.msra.mxu2 %v130_v6 }
  0x17   :  { %156 = vmatpush.msra.mxu2 %v129_v7 }
  0x8c   :  { %v92_v9 = vpop.f32.mrf.mxu0 }
  0x8d   :  { %v120_v10 = vpop.f32.mrf.mxu1 }
  0x8e   :  { %v121_v11 = vadd.f32 %v120_v10, %v92_v9 }
  0x90   :  { %v127_v12 = vadd.f32 %v190_v8, %v121_v11 }
  0x92   :  { %v128_v13 = vmax.f32 %v127_v12, 0.0 }
  0x94   :  { %185 = vmatmul.msk.f32.vlgmr.msra.gmra.mxu2 %vm137_vm4, %v128_v13 }
 0x117   :  { %v158_v15 = vpop.f32.mrf.mxu2 }
 0x118   :  { %v159_v16 = vadd.f32 %v191_v14, %v158_v15 }
 0x11a   :  { %v161_v18 = vmax.f32 %v159_v16, 0.0 }
 0x11c   :  { %v166_v19 = vmul.f32 %v192_v17, %v161_v18 }
 0x11e   :  { %v167_v20 = vsel %vm137_vm4, %v166_v19, 0.0 }
 0x11f   :  { %168 = vadd.xlane.f32.xlu0 %v167_v20 }
 0x192   :  { %v169_v22 = vpop.xlane.xlu0 %168 }
 0x193   :  { %v172_v23 = vadd.f32 %v171_v21, %v169_v22 }
 0x195   :  { %174 = vst.msk [vmem:[%s338_s9] sm:$0xff] %vm173_vm5, %v172_v23 }
 0x196   :  { %179 = vsyncpa [#allocation4], 1 }
 0x197   :  { %180 = vsyncpa [#allocation6], 1 }

</bundles_post_ra>
